<compile_context>
chip_gen: v5e
topology: v5e:2x2
jax: 0.10.0
libtpu: 0.0.40
codegen_flags: <defaults>
</compile_context>

<pallas_src>
import jax
import jax.numpy as jnp
from jax.experimental import pallas as pl
from jax.experimental.pallas import tpu as pltpu

NEG_SLOPE = 0.01  # torch.nn.LeakyReLU default negative_slope


def _leaky_relu(x):
    return jnp.where(x > 0, x, NEG_SLOPE * x)


def _round_up(n, m):
    return ((n + m - 1) // m) * m


def _pad_to(a, shape):
    return jnp.pad(a, [(0, s - d) for d, s in zip(a.shape, shape)])


def classifier_kernel(x_ref, w1_ref, b1_ref, w2_ref, b2_ref, w3_ref, b3_ref, out_ref):
    # x tile: (TB, 256) f32 -> bf16 cast in-kernel (VPU work hidden under the DMA).
    x = x_ref[...].astype(jnp.bfloat16)

    # fc1 + LeakyReLU   (Dropout is identity at inference)
    h1 = jnp.dot(x, w1_ref[...], preferred_element_type=jnp.float32) + b1_ref[...]
    h1 = _leaky_relu(h1).astype(jnp.bfloat16)

    # fc2 + LeakyReLU -> valid lanes 0..83; padded lanes 84..127 are exactly zero
    h2 = jnp.dot(h1, w2_ref[...], preferred_element_type=jnp.float32) + b2_ref[...]
    h2 = _leaky_relu(h2)

    # fc3 + LeakyReLU -> weights/bias were pre-shifted so the 10 valid outputs land
    # in lanes 84..93; every other lane is exactly zero (zero cols/bias, LeakyReLU(0)=0)
    h3 = jnp.dot(h2.astype(jnp.bfloat16), w3_ref[...],
                 preferred_element_type=jnp.float32) + b3_ref[...]
    h3 = _leaky_relu(h3)

    # Pack (out2 | out3) into one lane-dense bf16 slab with a single add:
    # lanes 0..83 = out2, lanes 84..93 = out3, lanes 94..127 = 0.
    out_ref[...] = (h2 + h3).astype(out_ref.dtype)


def _choose_tb(B):
    """Batch-tile rows: multiple of 16, ~>=4 grid steps for large B, capped at 2048."""
    if B <= 16:
        return _round_up(B, 8)
    tb = _round_up(pl.cdiv(B, 4), 16)
    return min(2048, tb)


def classifier_forward(x, packed_params):
    """x: [B, 256] float32. Returns (out2 [B, 84], out3 [B, 10]) in bfloat16."""
    w1p, b1p, w2p, b2p, w3p, b3p = packed_params
    B = x.shape[0]
    TB = _choose_tb(B)
    grid = (pl.cdiv(B, TB),)

    const = lambda shape: pl.BlockSpec(shape, lambda i: (0, 0))

    packed = pl.pallas_call(
        classifier_kernel,
        out_shape=jax.ShapeDtypeStruct((B, 128), jnp.bfloat16),
        grid=grid,
        in_specs=[
            pl.BlockSpec((TB, 256), lambda i: (i, 0)),   # x tile (f32)
            const((256, 128)), const((1, 128)),          # w1, b1 (VMEM-resident)
            const((128, 128)), const((1, 128)),          # w2, b2
            const((128, 128)), const((1, 128)),          # w3, b3 (cols shifted to 84..93)
        ],
        out_specs=pl.BlockSpec((TB, 128), lambda i: (i, 0)),
        compiler_params=pltpu.CompilerParams(
            dimension_semantics=("parallel",),
            vmem_limit_bytes=32 * 1024 * 1024,
        ),
    )(x, w1p, b1p, w2p, b2p, w3p, b3p)

    out2 = packed[:, :84]
    out3 = packed[:, 84:94]
    return out2, out3


def init_params(key):
    """PyTorch-Linear-style init (uniform +/- 1/sqrt(fan_in)).
    Weights stored transposed relative to PyTorch: [in_features, out_features]."""
    dims = [(256, 120), (120, 84), (84, 10)]
    params = []
    for fan_in, fan_out in dims:
        key, kw, kb = jax.random.split(key, 3)
        bound = 1.0 / jnp.sqrt(fan_in)
        w = jax.random.uniform(kw, (fan_in, fan_out), jnp.float32, -bound, bound)
        b = jax.random.uniform(kb, (1, fan_out), jnp.float32, -bound, bound)
        params.extend([w, b])
    return tuple(params)


def pack_params(params):
    """One-time lane-padding + bf16 cast of the weights (hoisted out of the call path).
    fc3's 10 columns are placed at lanes 84..93 so the kernel packs (out2 | out3)
    into one slab with a single add."""
    w1, b1, w2, b2, w3, b3 = params
    w1p = _pad_to(w1, (256, 128)).astype(jnp.bfloat16)
    b1p = _pad_to(b1, (1, 128)).astype(jnp.float32)
    w2p = _pad_to(w2, (128, 128)).astype(jnp.bfloat16)
    b2p = _pad_to(b2, (1, 128)).astype(jnp.float32)
    w3p = jnp.zeros((128, 128), jnp.float32).at[:84, 84:94].set(w3).astype(jnp.bfloat16)
    b3p = jnp.zeros((1, 128), jnp.float32).at[:, 84:94].set(b3)
    return (w1p, b1p, w2p, b2p, w3p, b3p)


def reference_forward(x, params):
    """Plain-JAX reference mirroring the kernel's bf16-stream / f32-accum precision."""
    w1, b1, w2, b2, w3, b3 = params
    xb = x.astype(jnp.bfloat16)
    h1 = _leaky_relu(jnp.dot(xb, w1.astype(jnp.bfloat16),
                             preferred_element_type=jnp.float32) + b1)
    h2 = _leaky_relu(jnp.dot(h1.astype(jnp.bfloat16), w2.astype(jnp.bfloat16),
                             preferred_element_type=jnp.float32) + b2)
    h3 = _leaky_relu(jnp.dot(h2.astype(jnp.bfloat16), w3.astype(jnp.bfloat16),
                             preferred_element_type=jnp.float32) + b3)
    return h2, h3


if __name__ == "__main__":
    key = jax.random.PRNGKey(0)
    key, kx = jax.random.split(key)

    B = 8
    x = jax.random.normal(kx, (B, 256), jnp.float32)
    params = init_params(key)
    packed_params = pack_params(params)

    fwd = jax.jit(classifier_forward)
    out2, out3 = fwd(x, packed_params)
    out2, out3 = jax.block_until_ready((out2, out3))

    ref2, ref3 = reference_forward(x, params)
    assert out2.shape == (B, 84) and out3.shape == (B, 10)
    assert jnp.allclose(out2.astype(jnp.float32), ref2, atol=2e-2, rtol=2e-2)
    assert jnp.allclose(out3.astype(jnp.float32), ref3, atol=2e-2, rtol=2e-2)

    print("KERNEL_OK")
</pallas_src>

<mosaic_0001>
module attributes {stable_mosaic.version = 11 : i64} {
  func.func @classifier_kernel(%arg0: i32, %arg1: memref<8x256xf32, #tpu.memory_space<vmem>>, %arg2: memref<256x128xbf16, #tpu.memory_space<vmem>>, %arg3: memref<1x128xf32, #tpu.memory_space<vmem>>, %arg4: memref<128x128xbf16, #tpu.memory_space<vmem>>, %arg5: memref<1x128xf32, #tpu.memory_space<vmem>>, %arg6: memref<128x128xbf16, #tpu.memory_space<vmem>>, %arg7: memref<1x128xf32, #tpu.memory_space<vmem>>, %arg8: memref<8x128xbf16, #tpu.memory_space<vmem>>) attributes {dimension_semantics = [#tpu.dimension_semantics<parallel>], iteration_bounds = array<i64: 1>, scalar_prefetch = 0 : i64, scratch_operands = 0 : i64, tpu.core_type = #tpu.core_type<tc>, window_params = [{transform_indices = @transform_0, window_bounds = array<i64: 8, 256>}, {pipeline_mode = #tpu.pipeline_mode<synchronous>, transform_indices = @transform_1, window_bounds = array<i64: 256, 128>}, {pipeline_mode = #tpu.pipeline_mode<synchronous>, transform_indices = @transform_2, window_bounds = array<i64: 1, 128>}, {pipeline_mode = #tpu.pipeline_mode<synchronous>, transform_indices = @transform_3, window_bounds = array<i64: 128, 128>}, {pipeline_mode = #tpu.pipeline_mode<synchronous>, transform_indices = @transform_4, window_bounds = array<i64: 1, 128>}, {pipeline_mode = #tpu.pipeline_mode<synchronous>, transform_indices = @transform_5, window_bounds = array<i64: 128, 128>}, {pipeline_mode = #tpu.pipeline_mode<synchronous>, transform_indices = @transform_6, window_bounds = array<i64: 1, 128>}, {transform_indices = @transform_7, window_bounds = array<i64: 8, 128>}]} {
    %c0 = arith.constant 0 : index
    %c0_0 = arith.constant 0 : index
    %0 = vector.load %arg1[%c0, %c0_0] : memref<8x256xf32, #tpu.memory_space<vmem>>, vector<8x256xf32>
    %1 = arith.truncf %0 : vector<8x256xf32> to vector<8x256xbf16>
    %c0_1 = arith.constant 0 : index
    %c0_2 = arith.constant 0 : index
    %2 = vector.load %arg2[%c0_1, %c0_2] : memref<256x128xbf16, #tpu.memory_space<vmem>>, vector<256x128xbf16>
    %cst = arith.constant dense<0.000000e+00> : vector<8x128xf32>
    %3 = tpu.matmul %1, %2, %cst {dimension_numbers = #tpu.dot_dimension_numbers<[1], [0], [0], [1], [0, 0, 1, 1], [], []>} : vector<8x256xbf16>, vector<256x128xbf16>, vector<8x128xf32> -> vector<8x128xf32>
    %c0_3 = arith.constant 0 : index
    %c0_4 = arith.constant 0 : index
    %4 = vector.load %arg3[%c0_3, %c0_4] : memref<1x128xf32, #tpu.memory_space<vmem>>, vector<1x128xf32>
    %5 = vector.broadcast %4 : vector<1x128xf32> to vector<8x128xf32>
    %6 = arith.addf %3, %5 : vector<8x128xf32>
    %cst_5 = arith.constant 0.000000e+00 : f32
    %7 = vector.broadcast %cst_5 : f32 to vector<8x128xf32>
    %8 = arith.cmpf ogt, %6, %7 : vector<8x128xf32>
    %cst_6 = arith.constant 0.00999999977 : f32
    %9 = vector.broadcast %cst_6 : f32 to vector<8x128xf32>
    %10 = arith.mulf %9, %6 : vector<8x128xf32>
    %11 = arith.select %8, %6, %10 : vector<8x128xi1>, vector<8x128xf32>
    %12 = arith.truncf %11 : vector<8x128xf32> to vector<8x128xbf16>
    %c0_7 = arith.constant 0 : index
    %c0_8 = arith.constant 0 : index
    %13 = vector.load %arg4[%c0_7, %c0_8] : memref<128x128xbf16, #tpu.memory_space<vmem>>, vector<128x128xbf16>
    %cst_9 = arith.constant dense<0.000000e+00> : vector<8x128xf32>
    %14 = tpu.matmul %12, %13, %cst_9 {dimension_numbers = #tpu.dot_dimension_numbers<[1], [0], [0], [1], [0, 0, 1, 1], [], []>} : vector<8x128xbf16>, vector<128x128xbf16>, vector<8x128xf32> -> vector<8x128xf32>
    %c0_10 = arith.constant 0 : index
    %c0_11 = arith.constant 0 : index
    %15 = vector.load %arg5[%c0_10, %c0_11] : memref<1x128xf32, #tpu.memory_space<vmem>>, vector<1x128xf32>
    %16 = vector.broadcast %15 : vector<1x128xf32> to vector<8x128xf32>
    %17 = arith.addf %14, %16 : vector<8x128xf32>
    %cst_12 = arith.constant 0.000000e+00 : f32
    %18 = vector.broadcast %cst_12 : f32 to vector<8x128xf32>
    %19 = arith.cmpf ogt, %17, %18 : vector<8x128xf32>
    %cst_13 = arith.constant 0.00999999977 : f32
    %20 = vector.broadcast %cst_13 : f32 to vector<8x128xf32>
    %21 = arith.mulf %20, %17 : vector<8x128xf32>
    %22 = arith.select %19, %17, %21 : vector<8x128xi1>, vector<8x128xf32>
    %23 = arith.truncf %22 : vector<8x128xf32> to vector<8x128xbf16>
    %c0_14 = arith.constant 0 : index
    %c0_15 = arith.constant 0 : index
    %24 = vector.load %arg6[%c0_14, %c0_15] : memref<128x128xbf16, #tpu.memory_space<vmem>>, vector<128x128xbf16>
    %cst_16 = arith.constant dense<0.000000e+00> : vector<8x128xf32>
    %25 = tpu.matmul %23, %24, %cst_16 {dimension_numbers = #tpu.dot_dimension_numbers<[1], [0], [0], [1], [0, 0, 1, 1], [], []>} : vector<8x128xbf16>, vector<128x128xbf16>, vector<8x128xf32> -> vector<8x128xf32>
    %c0_17 = arith.constant 0 : index
    %c0_18 = arith.constant 0 : index
    %26 = vector.load %arg7[%c0_17, %c0_18] : memref<1x128xf32, #tpu.memory_space<vmem>>, vector<1x128xf32>
    %27 = vector.broadcast %26 : vector<1x128xf32> to vector<8x128xf32>
    %28 = arith.addf %25, %27 : vector<8x128xf32>
    %cst_19 = arith.constant 0.000000e+00 : f32
    %29 = vector.broadcast %cst_19 : f32 to vector<8x128xf32>
    %30 = arith.cmpf ogt, %28, %29 : vector<8x128xf32>
    %cst_20 = arith.constant 0.00999999977 : f32
    %31 = vector.broadcast %cst_20 : f32 to vector<8x128xf32>
    %32 = arith.mulf %31, %28 : vector<8x128xf32>
    %33 = arith.select %30, %28, %32 : vector<8x128xi1>, vector<8x128xf32>
    %34 = arith.addf %22, %33 : vector<8x128xf32>
    %35 = arith.truncf %34 : vector<8x128xf32> to vector<8x128xbf16>
    %c0_21 = arith.constant 0 : index
    %c0_22 = arith.constant 0 : index
    %36 = vector.load %arg8[%c0_21, %c0_22] : memref<8x128xbf16, #tpu.memory_space<vmem>>, vector<8x128xbf16>
    tpu.vector_store %arg8[%c0_21, %c0_22], %35 {strides = array<i32>} : memref<8x128xbf16, #tpu.memory_space<vmem>>, vector<8x128xbf16>,
    return
  }
  func.func @transform_0(%arg0: i32) -> (i32, i32) {
    %c0_i32 = arith.constant 0 : i32
    %c0_i32_0 = arith.constant 0 : i32
    return %arg0, %c0_i32 : i32, i32
  }
  func.func @transform_1(%arg0: i32) -> (i32, i32) {
    %c0_i32 = arith.constant 0 : i32
    %c0_i32_0 = arith.constant 0 : i32
    %c0_i32_1 = arith.constant 0 : i32
    return %c0_i32, %c0_i32_0 : i32, i32
  }
  func.func @transform_2(%arg0: i32) -> (i32, i32) {
    %c0_i32 = arith.constant 0 : i32
    %c0_i32_0 = arith.constant 0 : i32
    %c0_i32_1 = arith.constant 0 : i32
    return %c0_i32, %c0_i32_0 : i32, i32
  }
  func.func @transform_3(%arg0: i32) -> (i32, i32) {
    %c0_i32 = arith.constant 0 : i32
    %c0_i32_0 = arith.constant 0 : i32
    %c0_i32_1 = arith.constant 0 : i32
    return %c0_i32, %c0_i32_0 : i32, i32
  }
  func.func @transform_4(%arg0: i32) -> (i32, i32) {
    %c0_i32 = arith.constant 0 : i32
    %c0_i32_0 = arith.constant 0 : i32
    %c0_i32_1 = arith.constant 0 : i32
    return %c0_i32, %c0_i32_0 : i32, i32
  }
  func.func @transform_5(%arg0: i32) -> (i32, i32) {
    %c0_i32 = arith.constant 0 : i32
    %c0_i32_0 = arith.constant 0 : i32
    %c0_i32_1 = arith.constant 0 : i32
    return %c0_i32, %c0_i32_0 : i32, i32
  }
  func.func @transform_6(%arg0: i32) -> (i32, i32) {
    %c0_i32 = arith.constant 0 : i32
    %c0_i32_0 = arith.constant 0 : i32
    %c0_i32_1 = arith.constant 0 : i32
    return %c0_i32, %c0_i32_0 : i32, i32
  }
  func.func @transform_7(%arg0: i32) -> (i32, i32) {
    %c0_i32 = arith.constant 0 : i32
    %c0_i32_0 = arith.constant 0 : i32
    return %arg0, %c0_i32 : i32, i32
  }
}

</mosaic_0001>

<bundles_post_ra>
// kernel: classifier_forward.1
= control target key start
LH: loop header
LB: loop body
LE: loop exit
PB: predicated region body
PF: predicated region fallthrough
CT: control target
= control target key end

     0   :  { %12 = vsyncpa [#allocation3], 0  ;;  %s773_s0 = inlined_call_operand.hbm [shape: f32[8,256], index: 0, kind: input, shape index: {}]   ;;  %s774_s1 = inlined_call_operand.hbm [shape: bf16[256,128], index: 1, kind: input, shape index: {}]   ;;  %s775_s2 = inlined_call_operand.vmem [shape: f32[1,128], index: 2, kind: input, shape index: {}]   ;;  %s776_s3 = inlined_call_operand.hbm [shape: bf16[128,128], index: 3, kind: input, shape index: {}]   ;;  %s777_s4 = inlined_call_operand.vmem [shape: f32[1,128], index: 4, kind: input, shape index: {}]   ;;  %s778_s5 = inlined_call_operand.hbm [shape: bf16[128,128], index: 5, kind: input, shape index: {}]   ;;  %s779_s6 = inlined_call_operand.vmem [shape: f32[1,128], index: 6, kind: input, shape index: {}]   ;;  %s780_s7 = inlined_call_operand.vmem [shape: bf16[8,128], index: 7, kind: output, shape index: {}]  }
   0x1   :  { %13 = vsyncpa [#allocation5], 0  ;;  %s30_s26 = sshll.u32 %s774_s1, 4  ;;  %s31_s26 = int_to_ptr.hbm [resolvable:$true] %s30_s26 }
   0x2   :  { %14 = vsyncpa [#allocation8], 0  ;;  %s703_s27 = smov [#allocation4]   ;;  %s20_s8 = sshll.u32 %s773_s0, 4  ;;  %s21_s8 = int_to_ptr.hbm [resolvable:$true] %s20_s8 }
   0x3   :  { %s32_s28 = sshll.u32 %s703_s27, 4  ;;  %s704_s9 = smov 64   ;;  %s33_s28 = int_to_ptr.vmem [resolvable:$true] %s32_s28 }
   0x4   :  { %s705_s10 = smov 4   ;;  %s706_s11 = smov [#allocation2]  }
   0x5   :  { %38 = dma.hbm_to_vmem [thread:$0]  %s31_s26, 2048, %s33_s28, [#allocation5], %s704_s9, %s704_s9, %s705_s10  }
   0x6   :  { %s22_s12 = sshll.u32 %s706_s11, 4  ;;  %s45_s15 = sshll.u32 %s776_s3, 4  ;;  %s23_s12 = int_to_ptr.vmem [resolvable:$true] %s22_s12  ;;  %s46_s15 = int_to_ptr.hbm [resolvable:$true] %s45_s15 }
   0x7   :  { %25 = dma.hbm_to_vmem [thread:$0]  %s21_s8, 256, %s23_s12, [#allocation3]  }
   0x8   :  { %s60_s17 = sshll.u32 %s778_s5, 4  ;;  %s707_s18 = smov [#allocation6]   ;;  %s61_s17 = int_to_ptr.hbm [resolvable:$true] %s60_s17 }
   0x9   :  { %s47_s19 = sshll.u32 %s707_s18, 4  ;;  %s708_s0 = smov [#allocation7]   ;;  %s48_s19 = int_to_ptr.vmem [resolvable:$true] %s47_s19 }
   0xa   :  { %53 = dma.hbm_to_vmem [thread:$0]  %s46_s15, 1024, %s48_s19, [#allocation5], %s704_s9, %s704_s9, %s705_s10  }
   0xb   :  { %s62_s20 = sshll.u32 %s708_s0, 4  ;;  %s63_s20 = int_to_ptr.vmem [resolvable:$true] %s62_s20 }
   0xc   :  { %68 = dma.hbm_to_vmem [thread:$0]  %s61_s17, 1024, %s63_s20, [#allocation8], %s704_s9, %s704_s9, %s705_s10  }
   0xd   :  { %697 = dma.done.wait [#allocation3], 256  }
   0xe   :  { %698 = vsyncadd [#allocation3], 4294967040 }
   0xf   :  { %699 = dma.done.wait [#allocation5], 3072  }
  0x10   :  { %700 = vsyncadd [#allocation5], 4294964224 }
  0x11   :  { %701 = dma.done.wait [#allocation8], 1024  }
  0x12   :  { %702 = vsyncadd [#allocation8], 4294966272  ;;  %v567_v0 = vld [vmem:[#allocation4 + $0x38] sm:$0xff]  ;;  %v566_v2 = vld [vmem:[#allocation4 + $0x30] sm:$0xff] }
  0x13   :  { %v575_v1 = vld [vmem:[#allocation4 + $0x78] sm:$0xff]  ;;  %223 = vmatpush.bf16.msra.mxu0 %v567_v0  ;;  %v574_v3 = vld [vmem:[#allocation4 + $0x70] sm:$0xff]  ;;  %v565_v4 = vld [vmem:[#allocation4 + $0x28] sm:$0xff] }
  0x14   :  { %236 = vmatpush.bf16.msra.mxu1 %v575_v1  ;;  %v573_v5 = vld [vmem:[#allocation4 + $0x68] sm:$0xff]  ;;  %v583_v6 = vld [vmem:[#allocation6 + $0x38] sm:$0xff]  ;;  %v582_v7 = vld [vmem:[#allocation6 + $0x30] sm:$0xff] }
  0x15   :  { %321 = vmatpush.bf16.msra.mxu2 %v583_v6  ;;  %v564_v8 = vld [vmem:[#allocation4 + $0x20] sm:$0xff]  ;;  %v581_v10 = vld [vmem:[#allocation6 + $0x28] sm:$0xff]  ;;  %v563_v11 = vld [vmem:[#allocation4 + $0x18] sm:$0xff] }
  0x16   :  { %v572_v9 = vld [vmem:[#allocation4 + $0x60] sm:$0xff]  ;;  %v571_v12 = vld [vmem:[#allocation4 + $0x58] sm:$0xff]  ;;  %v562_v14 = vld [vmem:[#allocation4 + $0x10] sm:$0xff] }
  0x17   :  { %224 = vmatpush.bf16.msra.mxu0 %v566_v2  ;;  %v580_v13 = vld [vmem:[#allocation6 + $0x20] sm:$0xff]  ;;  %v570_v15 = vld [vmem:[#allocation4 + $0x50] sm:$0xff]  ;;  %v579_v16 = vld [vmem:[#allocation6 + $0x18] sm:$0xff] }
  0x18   :  { %237 = vmatpush.bf16.msra.mxu1 %v574_v3  ;;  %v561_v17 = vld [vmem:[#allocation4 + $0x8] sm:$0xff]  ;;  %v578_v19 = vld [vmem:[#allocation6 + $0x10] sm:$0xff]  ;;  %v560_v20 = vld [vmem:[#allocation4] sm:$0xff] }
  0x19   :  { %322 = vmatpush.bf16.msra.mxu2 %v582_v7  ;;  %v569_v18 = vld [vmem:[#allocation4 + $0x48] sm:$0xff]  ;;  %v568_v21 = vld [vmem:[#allocation4 + $0x40] sm:$0xff]  ;;  %v87_v22 = vld [vmem:[#allocation2] sm:$0xff] }
  0x1a   :  { %v88_v23 = vld [vmem:[#allocation2 + $0x8] sm:$0xff]  ;;  %v89_v24 = vpack.c.bf16 %v87_v22, %v87_v22  ;;  %v577_v26 = vld [vmem:[#allocation6 + $0x8] sm:$0xff]  ;;  %v576_v27 = vld [vmem:[#allocation6] sm:$0xff] }
  0x1b   :  { %225 = vmatpush.bf16.msra.mxu0 %v565_v4  ;;  %v90_v25 = vpack.c.bf16 %v88_v23, %v88_v23  ;;  %v591_v28 = vld [vmem:[#allocation7 + $0x38] sm:$0xff]  ;;  %v590_v29 = vld [vmem:[#allocation7 + $0x30] sm:$0xff]  ;;  %v589_v30 = vld [vmem:[#allocation7 + $0x28] sm:$0xff] }
  0x1c   :  { %238 = vmatpush.bf16.msra.mxu1 %v573_v5  ;;  %406 = vmatpush.bf16.msra.mxu3 %v591_v28  ;;  %v588_v31 = vld [vmem:[#allocation7 + $0x20] sm:$0xff]  ;;  %v587_v32 = vld [vmem:[#allocation7 + $0x18] sm:$0xff]  ;;  %v586_v33 = vld [vmem:[#allocation7 + $0x10] sm:$0xff] }
  0x1d   :  { %323 = vmatpush.bf16.msra.mxu2 %v581_v10  ;;  %v598_v34 = vld [vmem:[%s775_s2] ss:$0 sm:$0xff]  ;;  %v585_v44 = vld [vmem:[#allocation7 + $0x8] sm:$0xff]  ;;  %v584_v45 = vld [vmem:[#allocation7] sm:$0xff] }
  0x1e   :  { %v599_v46 = vld [vmem:[%s777_s4] ss:$0 sm:$0xff] }
  0x1f   :  { %226 = vmatpush.bf16.msra.mxu0 %v564_v8  ;;  %v600_v53 = vld [vmem:[%s779_s6] ss:$0 sm:$0xff] }
  0x20   :  { %239 = vmatpush.bf16.msra.mxu1 %v572_v9  ;;  %407 = vmatpush.bf16.msra.mxu3 %v590_v29 }
  0x21   :  { %324 = vmatpush.bf16.msra.mxu2 %v580_v13 }
  0x23   :  { %227 = vmatpush.bf16.msra.mxu0 %v563_v11 }
  0x24   :  { %240 = vmatpush.bf16.msra.mxu1 %v571_v12  ;;  %408 = vmatpush.bf16.msra.mxu3 %v589_v30 }
  0x25   :  { %325 = vmatpush.bf16.msra.mxu2 %v579_v16 }
  0x27   :  { %228 = vmatpush.bf16.msra.mxu0 %v562_v14 }
  0x28   :  { %241 = vmatpush.bf16.msra.mxu1 %v570_v15  ;;  %409 = vmatpush.bf16.msra.mxu3 %v588_v31 }
  0x29   :  { %326 = vmatpush.bf16.msra.mxu2 %v578_v19 }
  0x2b   :  { %229 = vmatpush.bf16.msra.mxu0 %v561_v17 }
  0x2c   :  { %242 = vmatpush.bf16.msra.mxu1 %v569_v18  ;;  %410 = vmatpush.bf16.msra.mxu3 %v587_v32 }
  0x2d   :  { %327 = vmatpush.bf16.msra.mxu2 %v577_v26 }
  0x2f   :  { %230 = vmatpush.bf16.msra.mxu0 %v560_v20 }
  0x30   :  { %243 = vmatpush.bf16.msra.mxu1 %v568_v21  ;;  %411 = vmatpush.bf16.msra.mxu3 %v586_v33 }
  0x31   :  { %328 = vmatpush.bf16.msra.mxu2 %v576_v27 }
  0x32   :  { %231 = vmatmul.bf16.vlgmr.msra.gmra.mxu0 %v89_v24 }
  0x33   :  { %244 = vmatmul.bf16.vlgmr.msra.gmra.mxu1 %v90_v25 }
  0x34   :  { %412 = vmatpush.bf16.msra.mxu3 %v585_v44 }
  0x38   :  { %413 = vmatpush.bf16.msra.mxu3 %v584_v45 }
  0xaf   :  { %v232_v35 = vpop.f32.mrf.mxu0 }
  0xb0   :  { %v245_v36 = vpop.f32.mrf.mxu1  ;;  %v233_v37 = vadd.f32 %v598_v34, %v232_v35 }
  0xb2   :  { %v246_v38 = vadd.f32 %v245_v36, %v233_v37 }
  0xb4   :  { %v250_v39 = vmul.f32 0.01, %v246_v38  ;;  %vm249_vm0 = vcmp.gt.f32.partialorder %v246_v38, 0.0 }
  0xb6   :  { %v251_v40 = vsel %vm249_vm0, %v246_v38, %v250_v39 }
  0xb7   :  { %v234_v41 = vpop.f32.mrf.mxu0  ;;  %v252_v43 = vpack.c.bf16 %v251_v40, %v251_v40 }
  0xb8   :  { %v247_v42 = vpop.f32.mrf.mxu1 }
  0xb9   :  { %329 = vmatmul.bf16.vlgmr.msra.gmra.mxu2 %v252_v43 }
 0x13c   :  { %v330_v47 = vpop.f32.mrf.mxu2 }
 0x13d   :  { %v331_v48 = vadd.f32 %v599_v46, %v330_v47 }
 0x13f   :  { %v335_v49 = vmul.f32 0.01, %v331_v48  ;;  %vm334_vm1 = vcmp.gt.f32.partialorder %v331_v48, 0.0 }
 0x141   :  { %v336_v50 = vsel %vm334_vm1, %v331_v48, %v335_v49 }
 0x142   :  { %v337_v51 = vpack.c.bf16 %v336_v50, %v336_v50 }
 0x144   :  { %v332_v52 = vpop.f32.mrf.mxu2  ;;  %414 = vmatmul.bf16.vlgmr.msra.gmra.mxu3 %v337_v51 }
 0x1c7   :  { %v415_v54 = vpop.f32.mrf.mxu3 }
 0x1c8   :  { %v416_v55 = vadd.f32 %v600_v53, %v415_v54 }
 0x1ca   :  { %vm419_vm2 = vcmp.gt.f32.partialorder %v416_v55, 0.0  ;;  %v420_v56 = vmul.f32 0.01, %v416_v55 }
 0x1cc   :  { %v421_v57 = vsel %vm419_vm2, %v416_v55, %v420_v56 }
 0x1cd   :  { %v422_v58 = vadd.f32 %v421_v57, %v336_v50 }
 0x1cf   :  { %v423_v59 = vpack.c.bf16 %v422_v58, %v422_v58  ;;  %v417_v60 = vpop.f32.mrf.mxu3 }
 0x1d1   :  { %424 = vst [vmem:[%s780_s7] sm:$0xf] %v423_v59 }
 0x1d2   :  { %429 = vsyncpa [#allocation3], 1 }
 0x1d3   :  { %430 = vsyncpa [#allocation5], 1 }
 0x1d4   :  { %431 = vsyncpa [#allocation8], 1 }

</bundles_post_ra>
